<compile_context>
chip_gen: v6e
topology: v6e:2x2x1
jax: 0.10.0
libtpu: 0.0.40
codegen_flags: <defaults>
</compile_context>

<pallas_src>
import jax
import jax.numpy as jnp
from jax.experimental import pallas as pl
from jax.experimental.pallas import tpu as pltpu

IN_FEATURES = 128
OUT_FEATURES = 92
N_PAD = 128            # lane-dense padded output width
DEFAULT_BLOCK_M = 512  # row tile; sweepable 256-2048 for large M


def _linear_hardswish_kernel(x_ref, w_ref, b_ref, o_ref):
    # MXU matmul: (TM, 128) @ (128, 128) -> (TM, 128), f32 accumulate.
    y = jnp.dot(x_ref[...], w_ref[...], preferred_element_type=jnp.float32)
    y = y + b_ref[...]  # broadcast (1, 128) over rows
    # l1 * clamp(l1 + 3, 0, 6) / 6   (hardswish)
    out = y * jnp.clip(y + 3.0, 0.0, 6.0) * (1.0 / 6.0)
    o_ref[...] = out.astype(o_ref.dtype)


def linear_hardswish(x, w, b, *, block_m=DEFAULT_BLOCK_M):
    """x: (M, 128) f32, w: (128, 92) f32, b: (92,) f32 -> (M, 92) f32."""
    M = x.shape[0]

    # --- Pad N to 128 (lane-dense). Zero padding is safe: hardswish(0) = 0
    #     and the extra columns are sliced off below.
    w_p = jnp.zeros((IN_FEATURES, N_PAD), x.dtype).at[:, :OUT_FEATURES].set(w)
    b_p = jnp.zeros((1, N_PAD), x.dtype).at[:, :OUT_FEATURES].set(b)

    # --- Choose the M tile and pad M so the grid divides evenly.
    m_align8 = 8 * pl.cdiv(M, 8)          # sublane alignment
    tm = min(block_m, m_align8)
    m_pad = tm * pl.cdiv(m_align8, tm)
    if m_pad != M:
        x_p = jnp.zeros((m_pad, IN_FEATURES), x.dtype).at[:M].set(x)
    else:
        x_p = x

    grid = (m_pad // tm,)

    itemsize = jnp.dtype(x.dtype).itemsize
    cost = pl.CostEstimate(
        flops=2 * m_pad * IN_FEATURES * N_PAD,
        transcendentals=0,
        bytes_accessed=(x_p.size + w_p.size + b_p.size + m_pad * N_PAD) * itemsize,
    )

    out_padded = pl.pallas_call(
        _linear_hardswish_kernel,
        out_shape=jax.ShapeDtypeStruct((m_pad, N_PAD), x.dtype),
        grid=grid,
        in_specs=[
            pl.BlockSpec((tm, IN_FEATURES), lambda i: (i, 0)),        # x tile
            pl.BlockSpec((IN_FEATURES, N_PAD), lambda i: (0, 0)),     # W resident
            pl.BlockSpec((1, N_PAD), lambda i: (0, 0)),               # b resident
        ],
        out_specs=pl.BlockSpec((tm, N_PAD), lambda i: (i, 0)),
        compiler_params=pltpu.CompilerParams(
            dimension_semantics=("parallel",),
        ),
        cost_estimate=cost,
    )(x_p, w_p, b_p)

    return out_padded[:M, :OUT_FEATURES]


def init_params(key):
    # Mimic torch.nn.Linear default init: U(-1/sqrt(fan_in), 1/sqrt(fan_in)).
    kw, kb = jax.random.split(key)
    bound = 1.0 / jnp.sqrt(jnp.float32(IN_FEATURES))
    # Stored already transposed as (in, out) so the kernel does x @ W.
    w = jax.random.uniform(kw, (IN_FEATURES, OUT_FEATURES), jnp.float32,
                           minval=-bound, maxval=bound)
    b = jax.random.uniform(kb, (OUT_FEATURES,), jnp.float32,
                           minval=-bound, maxval=bound)
    return w, b


def _reference(x, w, b):
    l1 = x @ w + b
    return l1 * jnp.clip(l1 + 3.0, 0.0, 6.0) / 6.0


if __name__ == "__main__":
    key = jax.random.PRNGKey(0)
    k_x, k_x2, k_p = jax.random.split(key, 3)
    w, b = init_params(k_p)

    # Small batch (matches the module's fixed 128-feature input).
    batch = 8
    x = jax.random.normal(k_x, (batch, IN_FEATURES), dtype=jnp.float32)
    out = jax.block_until_ready(linear_hardswish(x, w, b))
    assert out.shape == (batch, OUT_FEATURES)
    assert jnp.allclose(out, _reference(x, w, b), atol=1e-5, rtol=1e-5)

    # Non-divisible M to exercise the M-grid + padding path.
    batch2 = 300
    x2 = jax.random.normal(k_x2, (batch2, IN_FEATURES), dtype=jnp.float32)
    out2 = jax.block_until_ready(linear_hardswish(x2, w, b))
    assert out2.shape == (batch2, OUT_FEATURES)
    assert jnp.allclose(out2, _reference(x2, w, b), atol=1e-5, rtol=1e-5)

    print("KERNEL_OK")
</pallas_src>

<mosaic_0001>
module attributes {stable_mosaic.version = 11 : i64} {
  func.func @_linear_hardswish_kernel(%arg0: i32, %arg1: memref<8x128xf32, #tpu.memory_space<vmem>>, %arg2: memref<128x128xf32, #tpu.memory_space<vmem>>, %arg3: memref<1x128xf32, #tpu.memory_space<vmem>>, %arg4: memref<8x128xf32, #tpu.memory_space<vmem>>) attributes {dimension_semantics = [#tpu.dimension_semantics<parallel>], iteration_bounds = array<i64: 1>, scalar_prefetch = 0 : i64, scratch_operands = 0 : i64, tpu.core_type = #tpu.core_type<tc>, window_params = [{transform_indices = @transform_0, window_bounds = array<i64: 8, 128>}, {pipeline_mode = #tpu.pipeline_mode<synchronous>, transform_indices = @transform_1, window_bounds = array<i64: 128, 128>}, {pipeline_mode = #tpu.pipeline_mode<synchronous>, transform_indices = @transform_2, window_bounds = array<i64: 1, 128>}, {transform_indices = @transform_3, window_bounds = array<i64: 8, 128>}]} {
    %c0 = arith.constant 0 : index
    %c0_0 = arith.constant 0 : index
    %0 = vector.load %arg1[%c0, %c0_0] : memref<8x128xf32, #tpu.memory_space<vmem>>, vector<8x128xf32>
    %c0_1 = arith.constant 0 : index
    %c0_2 = arith.constant 0 : index
    %1 = vector.load %arg2[%c0_1, %c0_2] : memref<128x128xf32, #tpu.memory_space<vmem>>, vector<128x128xf32>
    %cst = arith.constant dense<0.000000e+00> : vector<8x128xf32>
    %2 = tpu.matmul %0, %1, %cst {dimension_numbers = #tpu.dot_dimension_numbers<[1], [0], [0], [1], [0, 0, 1, 1], [], []>} : vector<8x128xf32>, vector<128x128xf32>, vector<8x128xf32> -> vector<8x128xf32>
    %c0_3 = arith.constant 0 : index
    %c0_4 = arith.constant 0 : index
    %3 = vector.load %arg3[%c0_3, %c0_4] : memref<1x128xf32, #tpu.memory_space<vmem>>, vector<1x128xf32>
    %4 = vector.broadcast %3 : vector<1x128xf32> to vector<8x128xf32>
    %5 = arith.addf %2, %4 : vector<8x128xf32>
    %cst_5 = arith.constant 3.000000e+00 : f32
    %6 = vector.broadcast %cst_5 : f32 to vector<8x128xf32>
    %7 = arith.addf %5, %6 : vector<8x128xf32>
    %cst_6 = arith.constant 0.000000e+00 : f32
    %cst_7 = arith.constant 6.000000e+00 : f32
    %8 = vector.broadcast %cst_6 : f32 to vector<8x128xf32>
    %9 = arith.maximumf %8, %7 : vector<8x128xf32>
    %10 = vector.broadcast %cst_7 : f32 to vector<8x128xf32>
    %11 = arith.minimumf %10, %9 : vector<8x128xf32>
    %12 = arith.mulf %5, %11 : vector<8x128xf32>
    %cst_8 = arith.constant 0.166666672 : f32
    %13 = vector.broadcast %cst_8 : f32 to vector<8x128xf32>
    %14 = arith.mulf %12, %13 : vector<8x128xf32>
    %c0_9 = arith.constant 0 : index
    %c0_10 = arith.constant 0 : index
    %15 = vector.load %arg4[%c0_9, %c0_10] : memref<8x128xf32, #tpu.memory_space<vmem>>, vector<8x128xf32>
    tpu.vector_store %arg4[%c0_9, %c0_10], %14 {strides = array<i32>} : memref<8x128xf32, #tpu.memory_space<vmem>>, vector<8x128xf32>,
    return
  }
  func.func @transform_0(%arg0: i32) -> (i32, i32) {
    %c0_i32 = arith.constant 0 : i32
    %c0_i32_0 = arith.constant 0 : i32
    return %arg0, %c0_i32 : i32, i32
  }
  func.func @transform_1(%arg0: i32) -> (i32, i32) {
    %c0_i32 = arith.constant 0 : i32
    %c0_i32_0 = arith.constant 0 : i32
    %c0_i32_1 = arith.constant 0 : i32
    return %c0_i32, %c0_i32_0 : i32, i32
  }
  func.func @transform_2(%arg0: i32) -> (i32, i32) {
    %c0_i32 = arith.constant 0 : i32
    %c0_i32_0 = arith.constant 0 : i32
    %c0_i32_1 = arith.constant 0 : i32
    return %c0_i32, %c0_i32_0 : i32, i32
  }
  func.func @transform_3(%arg0: i32) -> (i32, i32) {
    %c0_i32 = arith.constant 0 : i32
    %c0_i32_0 = arith.constant 0 : i32
    return %arg0, %c0_i32 : i32, i32
  }
}

</mosaic_0001>

<bundles_post_ra>
// kernel: tpu_custom_call.1
= control target key start
LH: loop header
LB: loop body
LE: loop exit
PB: predicated region body
PF: predicated region fallthrough
CT: control target
= control target key end

     0   :  { %8 = vsyncpa [#allocation3], 0  ;;  %s322_s0 = inlined_call_operand.hbm [shape: f32[8,128], index: 0, kind: input, shape index: {}]   ;;  %s323_s1 = inlined_call_operand.hbm [shape: f32[128,128], index: 1, kind: input, shape index: {}]   ;;  %s324_s2 = inlined_call_operand.vmem [shape: f32[1,128], index: 2, kind: input, shape index: {}]   ;;  %s325_s3 = inlined_call_operand.hbm [shape: f32[8,128], index: 3, kind: output, shape index: {}]  }
   0x1   :  { %9 = vsyncpa [#allocation6], 0 }
   0x2   :  { %10 = vsyncpa [#allocation4], 0  ;;  %s283_s12 = smov [#allocation2]   ;;  %s284_s14 = smov [#allocation5]  }
   0x3   :  { %s17_s13 = sshll.u32 %s283_s12, 4  ;;  %s26_s15 = sshll.u32 %s284_s14, 4  ;;  %s18_s13 = int_to_ptr.vmem [resolvable:$true] %s17_s13  ;;  %s27_s15 = int_to_ptr.vmem [resolvable:$true] %s26_s15 }
   0x4   :  { %s225_s16 = scalar_lea.vmem %s18_s13, 128  ;;  %p230_p1 = scmp.lt.s32.totalorder %s18_s13, %s18_s13 }
   0x5   :  { %p226_p0 = scmp.ne.s32.totalorder %s18_s13, %s225_s16  ;;  %p231_p2 = scmp.lt.s32.totalorder %s225_s16, %s225_s16 }
   0x7   :  { %p232_p3 = por %p231_p2, %p230_p1 }
   0x9   :  { %p233_p4 = pnand %p232_p3, %p226_p0 }
   0xb   :  { %236 = shalt.err (!%p233_p4)
}
   0xc   :  { %20 = dma.hbm_to_vmem [thread:$0]  %s322_s0, 128, %s18_s13, [#allocation3]  }
   0xd   :  { %s245_s19 = scalar_lea.vmem %s27_s15, 2048  ;;  %p250_p6 = scmp.lt.s32.totalorder %s27_s15, %s27_s15 }
   0xe   :  { %p246_p5 = scmp.ne.s32.totalorder %s27_s15, %s245_s19  ;;  %p251_p7 = scmp.lt.s32.totalorder %s245_s19, %s245_s19 }
  0x10   :  { %p252_p8 = por %p251_p7, %p250_p6 }
  0x12   :  { %p253_p9 = pnand %p252_p8, %p246_p5 }
  0x14   :  { %256 = shalt.err (!%p253_p9)
}
  0x15   :  { %s285_s20 = smov 128   ;;  %s286_s21 = smov 8  }
  0x16   :  { %32 = dma.hbm_to_vmem [thread:$0]  %s323_s1, 2048, %s27_s15, [#allocation6], %s285_s20, %s285_s20, %s286_s21  }
  0x17   :  { %277 = dma.done.wait [#allocation3], 128  }
  0x18   :  { %278 = vsyncadd [#allocation3], 4294967168 }
  0x19   :  { %279 = dma.done.wait [#allocation6], 2048  }
  0x1a   :  { %280 = vsyncadd [#allocation6], 4294965248  ;;  %v287_v0 = vmov 0.0   ;;  %vm288_vm0 = vmmov 0   ;;  %v57_v1 = vld [vmem:[#allocation5 + $0x78] sm:$0xff]  ;;  %v56_v2 = vld [vmem:[#allocation5 + $0x70] sm:$0xff] }
  0x1b   :  { %175 = vmatprep.subr.mxu0 %v287_v0  ;;  %207 = vmatprep.mubr.msk.f32.mxu0 %vm288_vm0, %v287_v0  ;;  %v55_v3 = vld [vmem:[#allocation5 + $0x68] sm:$0xff]  ;;  %v54_v4 = vld [vmem:[#allocation5 + $0x60] sm:$0xff]  ;;  %v53_v5 = vld [vmem:[#allocation5 + $0x58] sm:$0xff]  ;;  %s289_s24 = smov [#allocation7]  }
  0x1c   :  { %176 = vmatpush3.msra.mxu0 %v57_v1  ;;  %v52_v6 = vld [vmem:[#allocation5 + $0x50] sm:$0xff]  ;;  %v51_v7 = vld [vmem:[#allocation5 + $0x48] sm:$0xff]  ;;  %v50_v8 = vld [vmem:[#allocation5 + $0x40] sm:$0xff]  ;;  %s147_s25 = sshll.u32 %s289_s24, 4  ;;  %s148_s25 = int_to_ptr.vmem [resolvable:$true] %s147_s25 }
  0x1d   :  { %177 = vmatprep.subr.mxu0 %v287_v0  ;;  %v49_v9 = vld [vmem:[#allocation5 + $0x38] sm:$0xff]  ;;  %v48_v10 = vld [vmem:[#allocation5 + $0x30] sm:$0xff]  ;;  %v47_v11 = vld [vmem:[#allocation5 + $0x28] sm:$0xff]  ;;  %s257_s26 = scalar_lea.vmem %s148_s25, 128  ;;  %p262_p11 = scmp.lt.s32.totalorder %s148_s25, %s148_s25 }
  0x1e   :  { %178 = vmatpush3.msra.mxu0 %v56_v2  ;;  %v46_v12 = vld [vmem:[#allocation5 + $0x20] sm:$0xff]  ;;  %v45_v13 = vld [vmem:[#allocation5 + $0x18] sm:$0xff]  ;;  %v44_v14 = vld [vmem:[#allocation5 + $0x10] sm:$0xff]  ;;  %p258_p10 = scmp.ne.s32.totalorder %s148_s25, %s257_s26  ;;  %p263_p12 = scmp.lt.s32.totalorder %s257_s26, %s257_s26 }
  0x1f   :  { %179 = vmatprep.subr.mxu0 %v287_v0  ;;  %v43_v15 = vld [vmem:[#allocation5 + $0x8] sm:$0xff]  ;;  %v42_v16 = vld [vmem:[#allocation5] sm:$0xff]  ;;  %v41_v17 = vld [vmem:[#allocation2] sm:$0xff] }
  0x20   :  { %180 = vmatpush3.msra.mxu0 %v55_v3  ;;  %v157_v18 = vld [vmem:[%s324_s2] ss:$0 sm:$0xff]  ;;  %p264_p13 = por %p263_p12, %p262_p11 }
  0x21   :  { %181 = vmatprep.subr.mxu0 %v287_v0 }
  0x22   :  { %182 = vmatpush3.msra.mxu0 %v54_v4  ;;  %p265_p0 = pnand %p264_p13, %p258_p10 }
  0x23   :  { %183 = vmatprep.subr.mxu0 %v287_v0 }
  0x24   :  { %184 = vmatpush3.msra.mxu0 %v53_v5 }
  0x25   :  { %185 = vmatprep.subr.mxu0 %v287_v0 }
  0x26   :  { %186 = vmatpush3.msra.mxu0 %v52_v6 }
  0x27   :  { %187 = vmatprep.subr.mxu0 %v287_v0 }
  0x28   :  { %188 = vmatpush3.msra.mxu0 %v51_v7 }
  0x29   :  { %189 = vmatprep.subr.mxu0 %v287_v0 }
  0x2a   :  { %190 = vmatpush3.msra.mxu0 %v50_v8 }
  0x2b   :  { %191 = vmatprep.subr.mxu0 %v287_v0 }
  0x2c   :  { %192 = vmatpush3.msra.mxu0 %v49_v9 }
  0x2d   :  { %193 = vmatprep.subr.mxu0 %v287_v0 }
  0x2e   :  { %194 = vmatpush3.msra.mxu0 %v48_v10 }
  0x2f   :  { %195 = vmatprep.subr.mxu0 %v287_v0 }
  0x30   :  { %196 = vmatpush3.msra.mxu0 %v47_v11 }
  0x31   :  { %197 = vmatprep.subr.mxu0 %v287_v0 }
  0x32   :  { %198 = vmatpush3.msra.mxu0 %v46_v12 }
  0x33   :  { %199 = vmatprep.subr.mxu0 %v287_v0 }
  0x34   :  { %200 = vmatpush3.msra.mxu0 %v45_v13 }
  0x35   :  { %201 = vmatprep.subr.mxu0 %v287_v0 }
  0x36   :  { %202 = vmatpush3.msra.mxu0 %v44_v14 }
  0x37   :  { %203 = vmatprep.subr.mxu0 %v287_v0 }
  0x38   :  { %204 = vmatpush3.msra.mxu0 %v43_v15 }
  0x39   :  { %205 = vmatprep.subr.mxu0 %v287_v0 }
  0x3a   :  { %206 = vmatpush3.msra.mxu0 %v42_v16 }
  0x3b   :  { %208 = vmatmul.mubr.f32.vlgmr.msra.gmra.mxu0 %v41_v17 }
  0xfb   :  { %v131_v19 = vpop.f32.mrf.mxu0 }
  0xfc   :  { %v132_v20 = vadd.f32 %v157_v18, %v131_v19 }
  0xfd   :  { %v209_v21 = vpop.f32.mrf.mxu0 }
  0xfe   :  { %v135_v22 = vadd.f32 3.0, %v132_v20 }
 0x100   :  { %v136_v23 = vmax.f32 %v135_v22, 0.0 }
 0x102   :  { %v137_v24 = vmin.f32 %v136_v23, 6.0 }
 0x104   :  { %v138_v25 = vmul.f32 %v137_v24, %v132_v20 }
 0x106   :  { %v139_v26 = vmul.f32 0.16666667, %v138_v25 }
 0x108   :  { %140 = vst [vmem:[#allocation7] sm:$0xff] %v139_v26 }
 0x109   :  { %268 = shalt.err (!%p265_p0)
}
 0x10a   :  { %150 = dma.vmem_to_hbm [thread:$0]  %s148_s25, 128, %s325_s3, [#allocation4]  }
 0x10b   :  { %281 = dma.done.wait [#allocation4], 128  }
 0x10c   :  { %282 = vsyncadd [#allocation4], 4294967168 }
 0x10d   :  { %154 = vsyncpa [#allocation3], 1 }
 0x10e   :  { %155 = vsyncpa [#allocation6], 1 }
 0x10f   :  { %156 = vsyncpa [#allocation4], 1 }

</bundles_post_ra>
